<compile_context>
chip_gen: v7x
topology: tpu7x:2x2x1
jax: 0.10.0
libtpu: 0.0.40
codegen_flags: <defaults>
</compile_context>

<pallas_src>
import functools

import jax
import jax.numpy as jnp
import numpy as np
from jax import lax
from jax.experimental import pallas as pl
from jax.experimental.pallas import tpu as pltpu


def _supcon_kernel(anchor_ref, contrast_ref, lab_row_ref, lab_col_ref, out_ref,
                   *, inv_temp, tile_m, eps):
    """One grid step = `tile_m` anchor rows vs ALL contrast columns."""
    k = pl.program_id(0)

    a = anchor_ref[...]            # (tile_m, D) f32
    c = contrast_ref[...]          # (M, D)      f32, resident across the grid
    lab_a = lab_row_ref[...]       # (tile_m, 1) int32
    lab_c = lab_col_ref[...]       # (1, M)      int32, resident

    # logits = (A_tile @ C.T) / temperature  — MXU, contract last dims, f32 accumulate.
    s = lax.dot_general(a, c, (((1,), (1,)), ((), ())),
                        preferred_element_type=jnp.float32) * inv_temp      # (tile_m, M)

    # Positive-pair mask (same label) and self-contrast exclusion (global diagonal).
    pos_mask = (lab_a == lab_c).astype(jnp.float32)                          # (tile_m, M)
    row_ids = k * tile_m + lax.broadcasted_iota(jnp.int32, s.shape, 0)
    col_ids = lax.broadcasted_iota(jnp.int32, s.shape, 1)
    logits_mask = (row_ids != col_ids).astype(jnp.float32)
    mask = pos_mask * logits_mask

    # Row-stabilized log-softmax over non-self columns (matches reference exactly:
    # max over ALL columns incl. self, denominator excludes self, +eps inside log).
    m = jnp.max(s, axis=1, keepdims=True)                                    # (tile_m, 1)
    logits = s - m
    exp_logits = jnp.exp(logits) * logits_mask
    log_denom = jnp.log(jnp.sum(exp_logits, axis=1, keepdims=True) + eps)    # (tile_m, 1)

    pos_sum = jnp.sum(mask * (logits - log_denom), axis=1, keepdims=True)    # (tile_m, 1)
    pos_cnt = jnp.sum(mask, axis=1, keepdims=True)                           # (tile_m, 1)

    # mean log-prob over positives (NaN if a row has no positives, same as reference).
    out_ref[...] = pos_sum / pos_cnt


def contrastive_loss(features, labels_onehot, batch=None, mask=None, *,
                     temperature=0.07, contrast_mode='all', base_temperature=0.07,
                     tile_m=None):
    """Pallas forward of ContrastiveLoss.

    features:      (bsz, n_views, ...)   — flattened to (bsz, n_views, D)
    labels_onehot: (bsz, n_class) one-hot (matches the torch `(labels==1).nonzero()` path)
    batch:         unused by the loss (kept for signature parity)
    """
    del batch
    if features.ndim < 3:
        raise ValueError('`features` needs to be [bsz, n_views, ...]')
    if mask is not None:
        # TODO(synk): explicit-mask / unsupervised (SimCLR eye-mask) path not implemented.
        raise NotImplementedError('only the supervised (labels) path is implemented')

    bsz, n_views = features.shape[0], features.shape[1]
    feats = features.reshape(bsz, n_views, -1).astype(jnp.float32)
    D = feats.shape[-1]
    M = n_views * bsz

    # torch.cat(torch.unbind(features, dim=1), dim=0): view-major stacking.
    contrast = jnp.transpose(feats, (1, 0, 2)).reshape(M, D)
    if contrast_mode == 'all':
        anchor = contrast
    elif contrast_mode == 'one':
        anchor = feats[:, 0, :]                 # anchor rows == contrast rows [0, bsz)
    else:
        raise ValueError(f'Unknown mode: {contrast_mode}')
    Ma = anchor.shape[0]

    # one-hot labels -> class ids (== (labels==1).nonzero()[:,1] in torch), tiled per view.
    class_ids = jnp.argmax(labels_onehot, axis=-1).astype(jnp.int32)         # (bsz,)
    lab_full = jnp.tile(class_ids, n_views)                                   # (M,)
    lab_row = lab_full[:Ma].reshape(Ma, 1)
    lab_col = lab_full.reshape(1, M)

    if tile_m is None:
        tile_m = min(Ma, 512)
    assert Ma % tile_m == 0, 'tile_m must divide the number of anchor rows'
    n_tiles = Ma // tile_m

    kernel = functools.partial(_supcon_kernel,
                               inv_temp=float(1.0 / temperature),
                               tile_m=int(tile_m), eps=1e-6)

    mean_log_prob_pos = pl.pallas_call(
        kernel,
        out_shape=jax.ShapeDtypeStruct((Ma, 1), jnp.float32),
        grid_spec=pltpu.PrefetchScalarGridSpec(
            num_scalar_prefetch=0,
            grid=(n_tiles,),
            in_specs=[
                pl.BlockSpec((tile_m, D), lambda k: (k, 0)),    # anchor tile (streamed)
                pl.BlockSpec((M, D), lambda k: (0, 0)),         # contrast     (resident)
                pl.BlockSpec((tile_m, 1), lambda k: (k, 0)),    # row labels   (streamed)
                pl.BlockSpec((1, M), lambda k: (0, 0)),         # col labels   (resident)
            ],
            out_specs=pl.BlockSpec((tile_m, 1), lambda k: (k, 0)),
        ),
        compiler_params=pltpu.CompilerParams(
            dimension_semantics=("parallel",),        # rows independent -> v7x 2-TC shard
            vmem_limit_bytes=32 * 1024 * 1024),
    )(anchor, contrast, lab_row, lab_col)

    loss = -(temperature / base_temperature) * mean_log_prob_pos[:, 0]
    return jnp.mean(loss) / 100.0


def contrastive_loss_ref(features, labels_onehot, *, temperature=0.07,
                         base_temperature=0.07):
    """Pure-JAX reference mirroring the module's math (contrast_mode='all')."""
    bsz, n_views = features.shape[0], features.shape[1]
    feats = features.reshape(bsz, n_views, -1).astype(jnp.float32)
    M = n_views * bsz
    contrast = jnp.transpose(feats, (1, 0, 2)).reshape(M, -1)
    anchor = contrast
    class_ids = jnp.argmax(labels_onehot, axis=-1)
    lab = jnp.tile(class_ids, n_views)
    pos_mask = (lab[:, None] == lab[None, :]).astype(jnp.float32)
    adc = (anchor @ contrast.T) / temperature
    logits = adc - jnp.max(adc, axis=1, keepdims=True)
    logits_mask = 1.0 - jnp.eye(M, dtype=jnp.float32)
    msk = pos_mask * logits_mask
    exp_logits = jnp.exp(logits) * logits_mask
    log_prob = logits - jnp.log(jnp.sum(exp_logits, axis=1, keepdims=True) + 1e-6)
    mlpp = jnp.sum(msk * log_prob, axis=1) / jnp.sum(msk, axis=1)
    loss = -(temperature / base_temperature) * mlpp
    return jnp.mean(loss) / 100.0


if __name__ == "__main__":
    key = jax.random.PRNGKey(0)
    bsz, n_views, D, n_class = 64, 2, 128, 4
    k1, k2 = jax.random.split(key)

    feats = jax.random.normal(k1, (bsz, n_views, D), jnp.float32)
    feats = feats / jnp.linalg.norm(feats, axis=-1, keepdims=True)   # L2-normalized embeddings
    labels_int = jax.random.randint(k2, (bsz,), 0, n_class)
    labels = jax.nn.one_hot(labels_int, n_class, dtype=jnp.float32)  # one-hot, as the module expects
    batch = None                                                      # unused by the loss

    loss = contrastive_loss(feats, labels, batch,
                            temperature=0.07, base_temperature=0.07,
                            contrast_mode='all', tile_m=64)           # grid of 2 row tiles
    loss = jax.block_until_ready(loss)

    ref = jax.block_until_ready(
        contrastive_loss_ref(feats, labels, temperature=0.07, base_temperature=0.07))

    np.testing.assert_allclose(np.asarray(loss), np.asarray(ref), rtol=1e-3, atol=1e-5)
    print("KERNEL_OK")
</pallas_src>

<mosaic_0001>
module attributes {stable_mosaic.version = 11 : i64} {
  func.func @_supcon_kernel(%arg0: i32, %arg1: memref<64x128xf32, #tpu.memory_space<vmem>>, %arg2: memref<128x128xf32, #tpu.memory_space<vmem>>, %arg3: memref<64x1xi32, #tpu.memory_space<vmem>>, %arg4: memref<1x128xi32, #tpu.memory_space<vmem>>, %arg5: memref<64x1xf32, #tpu.memory_space<vmem>>) attributes {dimension_semantics = [#tpu.dimension_semantics<parallel>], iteration_bounds = array<i64: 2>, scalar_prefetch = 0 : i64, scratch_operands = 0 : i64, tpu.core_type = #tpu.core_type<tc>, window_params = [{transform_indices = @transform_0, window_bounds = array<i64: 64, 128>}, {pipeline_mode = #tpu.pipeline_mode<synchronous>, transform_indices = @transform_1, window_bounds = array<i64: 128, 128>}, {transform_indices = @transform_2, window_bounds = array<i64: 64, 1>}, {pipeline_mode = #tpu.pipeline_mode<synchronous>, transform_indices = @transform_3, window_bounds = array<i64: 1, 128>}, {transform_indices = @transform_4, window_bounds = array<i64: 64, 1>}]} {
    %c0 = arith.constant 0 : index
    %c0_0 = arith.constant 0 : index
    %0 = vector.load %arg1[%c0, %c0_0] : memref<64x128xf32, #tpu.memory_space<vmem>>, vector<64x128xf32>
    %c0_1 = arith.constant 0 : index
    %c0_2 = arith.constant 0 : index
    %1 = vector.load %arg2[%c0_1, %c0_2] : memref<128x128xf32, #tpu.memory_space<vmem>>, vector<128x128xf32>
    %c0_3 = arith.constant 0 : index
    %c0_4 = arith.constant 0 : index
    %2 = vector.load %arg3[%c0_3, %c0_4] : memref<64x1xi32, #tpu.memory_space<vmem>>, vector<64x1xi32>
    %c0_5 = arith.constant 0 : index
    %c0_6 = arith.constant 0 : index
    %3 = vector.load %arg4[%c0_5, %c0_6] : memref<1x128xi32, #tpu.memory_space<vmem>>, vector<1x128xi32>
    %cst = arith.constant dense<0.000000e+00> : vector<64x128xf32>
    %4 = tpu.matmul %0, %1, %cst {dimension_numbers = #tpu.dot_dimension_numbers<[1], [1], [0], [0], [0, 0, 1, 0], [], []>} : vector<64x128xf32>, vector<128x128xf32>, vector<64x128xf32> -> vector<64x128xf32>
    %cst_7 = arith.constant 14.2857141 : f32
    %5 = vector.broadcast %cst_7 : f32 to vector<64x128xf32>
    %6 = arith.mulf %4, %5 : vector<64x128xf32>
    %7 = vector.broadcast %2 : vector<64x1xi32> to vector<64x128xi32>
    %8 = vector.broadcast %3 : vector<1x128xi32> to vector<64x128xi32>
    %9 = arith.cmpi eq, %7, %8 : vector<64x128xi32>
    %10 = arith.extui %9 : vector<64x128xi1> to vector<64x128xi32>
    %11 = arith.sitofp %10 : vector<64x128xi32> to vector<64x128xf32>
    %c64_i32 = arith.constant 64 : i32
    %12 = arith.muli %arg0, %c64_i32 : i32
    %13 = tpu.iota {dimensions = array<i32: 0>} : vector<64x128xi32>
    %14 = vector.broadcast %12 : i32 to vector<64x128xi32>
    %15 = arith.addi %14, %13 : vector<64x128xi32>
    %16 = tpu.iota {dimensions = array<i32: 1>} : vector<64x128xi32>
    %17 = arith.cmpi ne, %15, %16 : vector<64x128xi32>
    %18 = arith.extui %17 : vector<64x128xi1> to vector<64x128xi32>
    %19 = arith.sitofp %18 : vector<64x128xi32> to vector<64x128xf32>
    %20 = arith.mulf %11, %19 : vector<64x128xf32>
    %cst_8 = arith.constant dense<0xFF800000> : vector<64xf32>
    %21 = vector.multi_reduction <maximumf>, %6, %cst_8 [1] : vector<64x128xf32> to vector<64xf32>
    %22 = vector.shape_cast %21 : vector<64xf32> to vector<64x1xf32>
    %23 = vector.broadcast %22 : vector<64x1xf32> to vector<64x128xf32>
    %24 = arith.subf %6, %23 : vector<64x128xf32>
    %25 = math.exp %24 : vector<64x128xf32>
    %26 = arith.mulf %25, %19 : vector<64x128xf32>
    %cst_9 = arith.constant dense<0.000000e+00> : vector<64xf32>
    %27 = vector.multi_reduction <add>, %26, %cst_9 [1] : vector<64x128xf32> to vector<64xf32>
    %28 = vector.shape_cast %27 : vector<64xf32> to vector<64x1xf32>
    %cst_10 = arith.constant 9.99999997E-7 : f32
    %29 = vector.broadcast %cst_10 : f32 to vector<64x1xf32>
    %30 = arith.addf %28, %29 : vector<64x1xf32>
    %31 = math.log %30 : vector<64x1xf32>
    %32 = vector.broadcast %31 : vector<64x1xf32> to vector<64x128xf32>
    %33 = arith.subf %24, %32 : vector<64x128xf32>
    %34 = arith.mulf %20, %33 : vector<64x128xf32>
    %cst_11 = arith.constant dense<0.000000e+00> : vector<64xf32>
    %35 = vector.multi_reduction <add>, %34, %cst_11 [1] : vector<64x128xf32> to vector<64xf32>
    %36 = vector.shape_cast %35 : vector<64xf32> to vector<64x1xf32>
    %cst_12 = arith.constant dense<0.000000e+00> : vector<64xf32>
    %37 = vector.multi_reduction <add>, %20, %cst_12 [1] : vector<64x128xf32> to vector<64xf32>
    %38 = vector.shape_cast %37 : vector<64xf32> to vector<64x1xf32>
    %39 = arith.divf %36, %38 : vector<64x1xf32>
    %c0_13 = arith.constant 0 : index
    %c0_14 = arith.constant 0 : index
    %40 = vector.load %arg5[%c0_13, %c0_14] : memref<64x1xf32, #tpu.memory_space<vmem>>, vector<64x1xf32>
    tpu.vector_store %arg5[%c0_13, %c0_14], %39 {strides = array<i32>} : memref<64x1xf32, #tpu.memory_space<vmem>>, vector<64x1xf32>,
    return
  }
  func.func @transform_0(%arg0: i32) -> (i32, i32) {
    %c0_i32 = arith.constant 0 : i32
    %c0_i32_0 = arith.constant 0 : i32
    return %arg0, %c0_i32 : i32, i32
  }
  func.func @transform_1(%arg0: i32) -> (i32, i32) {
    %c0_i32 = arith.constant 0 : i32
    %c0_i32_0 = arith.constant 0 : i32
    %c0_i32_1 = arith.constant 0 : i32
    return %c0_i32, %c0_i32_0 : i32, i32
  }
  func.func @transform_2(%arg0: i32) -> (i32, i32) {
    %c0_i32 = arith.constant 0 : i32
    %c0_i32_0 = arith.constant 0 : i32
    return %arg0, %c0_i32 : i32, i32
  }
  func.func @transform_3(%arg0: i32) -> (i32, i32) {
    %c0_i32 = arith.constant 0 : i32
    %c0_i32_0 = arith.constant 0 : i32
    %c0_i32_1 = arith.constant 0 : i32
    return %c0_i32, %c0_i32_0 : i32, i32
  }
  func.func @transform_4(%arg0: i32) -> (i32, i32) {
    %c0_i32 = arith.constant 0 : i32
    %c0_i32_0 = arith.constant 0 : i32
    return %arg0, %c0_i32 : i32, i32
  }
}

</mosaic_0001>

<bundles_post_ra>
// kernel: tpu_custom_call.1
= control target key start
LH: loop header
LB: loop body
LE: loop exit
PB: predicated region body
PF: predicated region fallthrough
CT: control target
= control target key end

     0   :  { %9 = vsyncpa [#allocation3], 0  ;;  %s1022_s15 = smov 0   ;;  %s1233_s0 = inlined_call_operand.vmem [shape: f32[128,128], index: 0, kind: input, shape index: {}]   ;;  %s1234_s1 = inlined_call_operand.hbm [shape: f32[128,128], index: 1, kind: input, shape index: {}]   ;;  %s1235_s2 = inlined_call_operand.vmem [shape: s32[128,1], index: 2, kind: input, shape index: {}]   ;;  %s1236_s3 = inlined_call_operand.vmem [shape: s32[1,128], index: 3, kind: input, shape index: {}]   ;;  %s1237_s4 = inlined_call_operand.vmem [shape: f32[128,1], index: 4, kind: output, shape index: {}]  }
   0x1 LB: > { %s1028_s16 = sadd.s32 4294967295, %s990_s15   ;;  %p732_p0 = scmp.ge.s32.totalorder %s990_s15, 1  ;;  %s990_s15 = sphi %s1022_s15, %s15_s15  }
   0x2   : > { %p140_p1 = scmp.lt.s32.totalorder %s990_s15, 3  ;;  %s992_s17 = smov [#allocation2]  }
   0x3   : > { %s152_s18 = sshll.u32 %s992_s17, 4  ;;  %p1238_p3 = scmp.eq.s32.totalorder %s1028_s16, 0  ;;  %s153_s18 = int_to_ptr.vmem [resolvable:$true] %s152_s18 }
   0x4   : > { %p1032_p2 = pnand %p732_p0, %p140_p1  ;;  %s952_s23 = scalar_lea.hbm %s1234_s1, 2048 }
   0x5   : > { %p953_p6 = scmp.ne.s32.totalorder %s1234_s1, %s952_s23  ;;  %p959_p10 = scmp.lt.u32.totalorder %s952_s23, %s1234_s1 }
   0x6   : > { %s1240_s19 = scalar_select %p1032_p2, 1, 0 }
   0x7   : > { %p883_p4 = pneg %p1032_p2 }
   0x9   : > { %p1041_p5 = pnand %p1238_p3, %p883_p4 }
   0xb   : > { %p954_p7 = pneg %p1041_p5 }
   0xd   : > { %p955_p8 = pnand %p954_p7, %p953_p6 }
   0xf   : > { %p956_p9 = pneg %p955_p8 }
  0x11   : > { %p961_p11 = pnand %p959_p10, %p956_p9 }
  0x13   : > { %964 = shalt.err (!%p961_p11)
}
  0x14   : > { %s965_s28 = scalar_lea.vmem %s153_s18, 2048  ;;  %p973_p1 = scmp.lt.s32.totalorder %s153_s18, %s153_s18 }
  0x15   : > { %p966_p12 = scmp.ne.s32.totalorder %s153_s18, %s965_s28  ;;  %p974_p4 = scmp.lt.s32.totalorder %s965_s28, %s965_s28 }
  0x17   : > { %p968_p13 = pnand %p966_p12, %p954_p7  ;;  %p975_p3 = por %p974_p4, %p973_p1 }
  0x19   : > { %p969_p0 = pneg %p968_p13 }
  0x1b   : > { %p976_p2 = pnand %p975_p3, %p969_p0 }
  0x1d   : > { %979 = shalt.err (!%p976_p2)
}
  0x1e   : > { %s993_s29 = smov 128   ;;  %s994_s30 = smov 8  }
  0x1f   : > { %886 = dma.hbm_to_vmem [thread:$0]  (!%p1041_p5), %s1234_s1, 2048, %s153_s18, [#allocation3], %s993_s29, %s993_s29, %s994_s30  }
  0x20   : > { %p1242_p6 = scmp.ne.s32.totalorder %s1240_s19, 0 }
  0x21   : > { %p1243_p8 = scmp.eq.s32.totalorder (!%p1242_p6), %s1028_s16, 0 }
  0x22   : > { %189 = sbr.rel (%p1242_p6) target bundleno = 829 (0x33d), region = 36 }
  0x29   : > { %985 = dma.done.wait (%p1243_p8), [#allocation3], 2048   ;;  %p1244_p7 = pmov %p1243_p8 }
  0x2a   : > { %s737_s7 = sshll.u32 %s1028_s16, 3  ;;  %v246_v0 = vld [vmem:[#allocation2] sm:$0xff]  ;;  %v247_v1 = vld [vmem:[#allocation2 + $0x8] sm:$0xff]  ;;  %v248_v2 = vld [vmem:[#allocation2 + $0x10] sm:$0xff]  ;;  %v995_v48 = vmov 0   ;;  %v437_v49 = vlaneseq  ;;  %s752_s12 = sshll.u32 %s1028_s16, 6 }
  0x2b   : > { %987 = vsyncadd (%p1244_p7), [#allocation3], 4294965248  ;;  %p221_p2 = scmp.lt.s32.totalorder %s737_s7, 15  ;;  %v831_v3 = vpack.c.bf16 %v247_v1, %v246_v0  ;;  %v249_v4 = vld [vmem:[#allocation2 + $0x18] sm:$0xff]  ;;  %v250_v8 = vld [vmem:[#allocation2 + $0x20] sm:$0xff]  ;;  %903 = vset.pattern.permute.xlu1 %v995_v48  ;;  %902 = vset.pattern.permute.xlu0 %v995_v48  ;;  %v1090_v57 = vstv %s752_s12 }
  0x2c   : > { %v835_v5 = vpack.c.bf16 %v249_v4, %v248_v2  ;;  %v251_v9 = vld [vmem:[#allocation2 + $0x28] sm:$0xff]  ;;  %v252_v11 = vld [vmem:[#allocation2 + $0x30] sm:$0xff]  ;;  %v253_v12 = vld [vmem:[#allocation2 + $0x38] sm:$0xff]  ;;  %v438_v50 = vshrl.u32 %v437_v49, 7  ;;  %v1098_v1 = vand.u32 127, %v437_v49 }
  0x2d   : > { %s1246_s7 = smov (!%p221_p2, %s737_s7), 15  ;;  %832 = vmatprep.subr.bf16.mxu0 %v831_v3  ;;  %863 = vmatprep.subr.bf16.mxu1 %v831_v3  ;;  %v839_v10 = vpack.c.bf16 %v251_v9, %v250_v8  ;;  %v843_v13 = vpack.c.bf16 %v253_v12, %v252_v11  ;;  %v254_v14 = vld [vmem:[#allocation2 + $0x40] sm:$0xff]  ;;  %v255_v15 = vld [vmem:[#allocation2 + $0x48] sm:$0xff]  ;;  %v256_v17 = vld [vmem:[#allocation2 + $0x50] sm:$0xff] }
  0x2e   : > { %s1068_s8 = sshll.u32 %s1246_s7, 3  ;;  %834 = vmatpush3.bf16.xpose.msra.mxu0 %v831_v3  ;;  %871 = vmatpush3.bf16.xpose.msra.mxu1 %v831_v3  ;;  %v847_v16 = vpack.c.bf16 %v255_v15, %v254_v14  ;;  %v257_v18 = vld [vmem:[#allocation2 + $0x58] sm:$0xff]  ;;  %v258_v20 = vld [vmem:[#allocation2 + $0x60] sm:$0xff]  ;;  %v259_v21 = vld [vmem:[#allocation2 + $0x68] sm:$0xff]  ;;  %v439_v55 = vadd.s32 8, %v438_v50  ;;  %v443_v61 = vadd.s32 40, %v438_v50  ;;  %v447_v9 = vadd.s32 %v1090_v57, %v438_v50 }
  0x2f   : > { %s1074_s11 = scalar_lea.vmem %s1233_s0, %s1068_s8  ;;  %836 = vmatprep.subr.bf16.mxu0 %v835_v5  ;;  %864 = vmatprep.subr.bf16.mxu1 %v835_v5  ;;  %v851_v19 = vpack.c.bf16 %v257_v18, %v256_v17  ;;  %v855_v22 = vpack.c.bf16 %v259_v21, %v258_v20  ;;  %v260_v23 = vld [vmem:[#allocation2 + $0x70] sm:$0xff]  ;;  %v261_v24 = vld [vmem:[#allocation2 + $0x78] sm:$0xff]  ;;  %v441_v11 = vadd.s32 24, %v438_v50  ;;  %v996_v18 = vmov 0.0   ;;  %s230_s16 = scalar_lea.vmem %s1235_s2, %s1068_s8 }
  0x30   : > { %v238_v6 = vld [vmem:[%s1074_s11] sm:$0xff]  ;;  %v859_v25 = vpack.c.bf16 %v261_v24, %v260_v23  ;;  %v239_v26 = vld [vmem:[%s1074_s11 + $0x8] sm:$0xff]  ;;  %v240_v28 = vld [vmem:[%s1074_s11 + $0x10] sm:$0xff]  ;;  %v448_v0 = vadd.s32 %v1090_v57, %v439_v55  ;;  %vm457_vm2 = vcmp.ne.s32.totalorder %v447_v9, %v1098_v1  ;;  %s1212_s21 = scalar_lea.vmem %s1237_s4, %s1068_s8 }
  0x31   : > { %v242_v7 = vld [vmem:[%s1074_s11 + $0x20] sm:$0xff]  ;;  %819 = vmatprep.mubr.f32.mxu0 %v238_v6  ;;  %v243_v27 = vld [vmem:[%s1074_s11 + $0x28] sm:$0xff]  ;;  %v244_v29 = vld [vmem:[%s1074_s11 + $0x30] sm:$0xff]  ;;  %v452_v6 = vadd.s32 %v1090_v57, %v443_v61  ;;  %v450_v21 = vadd.s32 %v1090_v57, %v441_v11 }
  0x32   : > { %825 = vmatprep.mubr.f32.mxu1 %v242_v7  ;;  %v241_v30 = vld [vmem:[%s1074_s11 + $0x18] sm:$0xff]  ;;  %vm458_vm0 = vcmp.ne.s32.totalorder %v448_v0, %v1098_v1  ;;  %v263_v55 = vld [vmem:[%s230_s16 + $0x8] sm:$0xff]  ;;  %v268_v61 = vld [vmem:[%s230_s16 + $0x30] sm:$0xff] }
  0x33   : > { %v245_v31 = vld [vmem:[%s1074_s11 + $0x38] sm:$0xff]  ;;  %vm462_vm1 = vcmp.ne.s32.totalorder %v452_v6, %v1098_v1  ;;  %vm460_vm4 = vcmp.ne.s32.totalorder %v450_v21, %v1098_v1 }
  0x34   : > { %v269_v0 = vld [vmem:[%s230_s16 + $0x38] sm:$0xff] }
  0x36   : > { %838 = vmatpush3.bf16.xpose.msra.mxu0 %v835_v5  ;;  %872 = vmatpush3.bf16.xpose.msra.mxu1 %v835_v5 }
  0x37   : > { %840 = vmatprep.subr.bf16.mxu0 %v839_v10  ;;  %865 = vmatprep.subr.bf16.mxu1 %v839_v10 }
  0x3e   : > { %842 = vmatpush3.bf16.xpose.msra.mxu0 %v839_v10  ;;  %873 = vmatpush3.bf16.xpose.msra.mxu1 %v839_v10  ;;  %v442_v10 = vadd.s32 32, %v438_v50 }
  0x3f   : > { %844 = vmatprep.subr.bf16.mxu0 %v843_v13  ;;  %866 = vmatprep.subr.bf16.mxu1 %v843_v13 }
  0x40   : > { %v451_v20 = vadd.s32 %v1090_v57, %v442_v10  ;;  %v1167_v10 = vld [vmem:[%s1236_s3] ss:$0 sm:$0xff] }
  0x42   : > { %vm461_vm3 = vcmp.ne.s32.totalorder %v451_v20, %v1098_v1 }
  0x46   : > { %846 = vmatpush3.bf16.xpose.msra.mxu0 %v843_v13  ;;  %874 = vmatpush3.bf16.xpose.msra.mxu1 %v843_v13 }
  0x47   : > { %848 = vmatprep.subr.bf16.mxu0 %v847_v16  ;;  %867 = vmatprep.subr.bf16.mxu1 %v847_v16 }
  0x4e   : > { %850 = vmatpush3.bf16.xpose.msra.mxu0 %v847_v16  ;;  %875 = vmatpush3.bf16.xpose.msra.mxu1 %v847_v16 }
  0x4f   : > { %852 = vmatprep.subr.bf16.mxu0 %v851_v19  ;;  %868 = vmatprep.subr.bf16.mxu1 %v851_v19 }
  0x56   : > { %854 = vmatpush3.bf16.xpose.msra.mxu0 %v851_v19  ;;  %876 = vmatpush3.bf16.xpose.msra.mxu1 %v851_v19  ;;  %v1117_v19 = vsel %vm458_vm0, 1.0, %v996_v18  ;;  %vm641_vm0 = vcmask 7168  }
  0x57   : > { %856 = vmatprep.subr.bf16.mxu0 %v855_v22  ;;  %869 = vmatprep.subr.bf16.mxu1 %v855_v22 }
  0x5e   : > { %858 = vmatpush3.bf16.xpose.msra.mxu0 %v855_v22  ;;  %877 = vmatpush3.bf16.xpose.msra.mxu1 %v855_v22  ;;  %v440_v22 = vadd.s32 16, %v438_v50 }
  0x5f   : > { %860 = vmatprep.subr.bf16.mxu0 %v859_v25  ;;  %870 = vmatprep.subr.bf16.mxu1 %v859_v25 }
  0x66   : > { %862 = vmatpush3.bf16.xpose.msra.mxu0 %v859_v25  ;;  %878 = vmatpush3.bf16.xpose.msra.mxu1 %v859_v25  ;;  %v445_v25 = vadd.s32 56, %v438_v50 }
  0x6d   : > { %820 = vmatmul.mubr.f32.vlgmr.msra.gmra.mrb[0].mxu0 %v239_v26  ;;  %826 = vmatmul.mubr.f32.vlgmr.msra.gmra.mrb[0].mxu1 %v243_v27 }
  0x6e   : > { %822 = vmatprep.mubr.f32.mxu0 %v240_v28  ;;  %828 = vmatprep.mubr.f32.mxu1 %v244_v29  ;;  %v1126_v28 = vsel %vm457_vm2, 1.0, %v996_v18  ;;  %v1131_v29 = vsel %vm462_vm1, 1.0, %v996_v18 }
  0x71   : > { %823 = vmatmul.mubr.f32.gmra.mrb[2].mxu0 %v241_v30  ;;  %829 = vmatmul.mubr.f32.gmra.mrb[2].mxu1 %v245_v31  ;;  %v449_v31 = vadd.s32 %v1090_v57, %v440_v22 }
  0x73   : > { %vm459_vm5 = vcmp.ne.s32.totalorder %v449_v31, %v1098_v1 }
 0x140   : > { %v821_v32 = vpop.f32.mrb[0].mxu0  ;;  %v827_v33 = vpop.f32.mrb[0].mxu1 }
 0x141   : > { %v377_v34 = vmul.f32 14.285714, %v821_v32  ;;  %v381_v35 = vmul.f32 14.285714, %v827_v33  ;;  %v337_v36 = vpop.f32.mrb[1].mxu0  ;;  %v357_v37 = vpop.f32.mrb[1].mxu1 }
 0x142   : > { %v376_v40 = vmul.f32 14.285714, %v337_v36  ;;  %v380_v44 = vmul.f32 14.285714, %v357_v37  ;;  %v444_v32 = vadd.s32 48, %v438_v50  ;;  %v1140_v37 = vsel %vm461_vm3, 1.0, %v996_v18 }
 0x143   : > { %499 = vmax.xlane.f32.xlu1 %v381_v35  ;;  %491 = vmax.xlane.f32.xlu0 %v377_v34 }
 0x144   : > { %v824_v38 = vpop.f32.mrb[2].mxu0  ;;  %v830_v39 = vpop.f32.mrb[2].mxu1 }
 0x145   : > { %v379_v41 = vmul.f32 14.285714, %v824_v38  ;;  %v347_v42 = vpop.f32.mrb[3].mxu0  ;;  %v367_v43 = vpop.f32.mrb[3].mxu1  ;;  %v383_v46 = vmul.f32 14.285714, %v830_v39 }
 0x146   : > { %v378_v45 = vmul.f32 14.285714, %v347_v42  ;;  %v382_v47 = vmul.f32 14.285714, %v367_v43  ;;  %v1143_v39 = vsel %vm460_vm4, 1.0, %v996_v18 }
 0x147   : > { %489 = vmax.xlane.f32.xlu0 %v376_v40  ;;  %495 = vmax.xlane.f32.xlu1 %v379_v41 }
 0x14b   : > { %497 = vmax.xlane.f32.xlu0 %v380_v44  ;;  %493 = vmax.xlane.f32.xlu1 %v378_v45 }
 0x14f   : > { %501 = vmax.xlane.f32.xlu0 %v382_v47  ;;  %503 = vmax.xlane.f32.xlu1 %v383_v46 }
 0x1d0   : > { %v500_v51 = vpop.xlane.xlu1 %499  ;;  %v492_v52 = vpop.xlane.xlu0 %491 }
 0x1d1   : > { %v1085_v53 = vsub.f32 %v381_v35, %v500_v51  ;;  %v1087_v54 = vsub.f32 %v377_v34, %v492_v52  ;;  %v454_v34 = vadd.s32 %v1090_v57, %v445_v25 }
 0x1d3   : > { %v515_v56 = vmul.f32 1.442695, %v1087_v54  ;;  %v523_v58 = vmul.f32 1.442695, %v1085_v53  ;;  %vm464_vm6 = vcmp.ne.s32.totalorder %v454_v34, %v1098_v1 }
 0x1d4   : > { %v490_v59 = vpop.xlane.xlu0 %489  ;;  %v496_v60 = vpop.xlane.xlu1 %495 }
 0x1d5   : > { %v1093_v62 = vsub.f32 %v376_v40, %v490_v59  ;;  %v1095_v63 = vsub.f32 %v379_v41, %v496_v60  ;;  %904 = vpow2.f32 %v515_v56  ;;  %v453_v40 = vadd.s32 %v1090_v57, %v444_v32  ;;  %v264_v56 = vld [vmem:[%s230_s16 + $0x10] sm:$0xff]  ;;  %v265_v57 = vld [vmem:[%s230_s16 + $0x18] sm:$0xff]  ;;  %v266_v59 = vld [vmem:[%s230_s16 + $0x20] sm:$0xff] }
 0x1d6   : > { %906 = vpow2.f32 %v523_v58  ;;  %v262_v58 = vld [vmem:[%s230_s16] sm:$0xff]  ;;  %v267_v60 = vld [vmem:[%s230_s16 + $0x28] sm:$0xff] }
 0x1d7   : > { %v513_v2 = vmul.f32 1.442695, %v1093_v62  ;;  %v519_v3 = vmul.f32 1.442695, %v1095_v63  ;;  %vm463_vm7 = vcmp.ne.s32.totalorder %v453_v40, %v1098_v1 }
 0x1d8   : > { %v498_v4 = vpop.xlane.xlu0 %497  ;;  %v494_v5 = vpop.xlane.xlu1 %493  ;;  %v1157_v51 = vsel %vm463_vm7, 1.0, %v996_v18 }
 0x1d9   : > { %908 = vpow2.f32 %v513_v2  ;;  %v1103_v7 = vsub.f32 %v380_v44, %v498_v4  ;;  %v1105_v8 = vsub.f32 %v378_v45, %v494_v5  ;;  %v755_v45 = vsel %vm459_vm5, 1.0, %v996_v18 }
 0x1da   : > { %910 = vpow2.f32 %v519_v3 }
 0x1db   : > { %v521_v12 = vmul.f32 1.442695, %v1103_v7  ;;  %v517_v13 = vmul.f32 1.442695, %v1105_v8 }
 0x1dc   : > { %v502_v14 = vpop.xlane.xlu0 %501  ;;  %v504_v15 = vpop.xlane.xlu1 %503 }
 0x1dd   : > { %912 = vpow2.f32 %v521_v12  ;;  %v1112_v16 = vsub.f32 %v382_v47, %v502_v14  ;;  %v1114_v17 = vsub.f32 %v383_v46, %v504_v15  ;;  %v1152_v46 = vsel %vm464_vm6, 1.0, %v996_v18 }
 0x1de   : > { %914 = vpow2.f32 %v517_v13 }
 0x1df   : > { %v525_v23 = vmul.f32 1.442695, %v1112_v16  ;;  %v527_v24 = vmul.f32 1.442695, %v1114_v17  ;;  %v905_v26 = vpop.eup %904 }
 0x1e0   : > { %v530_v27 = vmul.f32 %v905_v26, %v1117_v19  ;;  %v907_v30 = vpop.eup %906 }
 0x1e1   : > { %916 = vpow2.f32 %v527_v24  ;;  %v534_v36 = vmul.f32 %v907_v30, %v1131_v29 }
 0x1e2   : > { %918 = vpow2.f32 %v525_v23  ;;  %539 = vadd.xlane.f32.xlu1 %v530_v27 }
 0x1e3   : > { %v909_v33 = vpop.eup %908 }
 0x1e4   : > { %v529_v35 = vmul.f32 %v909_v33, %v1126_v28  ;;  %v911_v38 = vpop.eup %910 }
 0x1e5   : > { %v532_v44 = vmul.f32 %v911_v38, %v1143_v39 }
 0x1e6   : > { %537 = vadd.xlane.f32.xlu0 %v529_v35  ;;  %547 = vadd.xlane.f32.xlu1 %v534_v36 }
 0x1e7   : > { %v913_v41 = vpop.eup %912 }
 0x1e8   : > { %v533_v42 = vmul.f32 %v913_v41, %v1140_v37  ;;  %v915_v43 = vpop.eup %914 }
 0x1e9   : > { %v531_v48 = vmul.f32 %v915_v43, %v755_v45 }
 0x1ea   : > { %545 = vadd.xlane.f32.xlu0 %v533_v42  ;;  %543 = vadd.xlane.f32.xlu1 %v532_v44 }
 0x1eb   : > { %v917_v47 = vpop.eup %916 }
 0x1ec   : > { %v919_v49 = vpop.eup %918  ;;  %v536_v50 = vmul.f32 %v917_v47, %v1152_v46 }
 0x1ed   : > { %v535_v52 = vmul.f32 %v919_v49, %v1157_v51 }
 0x1ee   : > { %541 = vadd.xlane.f32.xlu0 %v531_v48  ;;  %551 = vadd.xlane.f32.xlu1 %v536_v50 }
 0x1f2   : > { %549 = vadd.xlane.f32.xlu0 %v535_v52 }
 0x1ff   : > { %388 = vperm.xlu1 %903, %v263_v55  }
 0x203   : > { %391 = vperm.xlu1 %903, %v264_v56  }
 0x207   : > { %394 = vperm.xlu1 %903, %v265_v57  }
 0x208   : > { %385 = vperm.xlu0 %902, %v262_v58  }
 0x20b   : > { %397 = vperm.xlu1 %903, %v266_v59  }
 0x20f   : > { %400 = vperm.xlu1 %903, %v267_v60  }
 0x213   : > { %403 = vperm.xlu1 %903, %v268_v61  }
 0x217   : > { %406 = vperm.xlu1 %903, %v269_v0  }
 0x26f   : > { %v540_v1 = vpop.xlane.xlu1 %539 }
 0x270   : > { %v554_v22 = vadd.f32 1e-06, %v540_v1 }
 0x273   : > { %v538_v2 = vpop.xlane.xlu0 %537  ;;  %v548_v3 = vpop.xlane.xlu1 %547 }
 0x274   : > { %v553_v15 = vadd.f32 1e-06, %v538_v2  ;;  %v558_v32 = vadd.f32 1e-06, %v548_v3 }
 0x276   : > { %920 = vlog2.f32 %v553_v15 }
 0x277   : > { %v546_v4 = vpop.xlane.xlu0 %545  ;;  %v544_v5 = vpop.xlane.xlu1 %543  ;;  %922 = vlog2.f32 %v554_v22 }
 0x278   : > { %v557_v25 = vadd.f32 1e-06, %v546_v4  ;;  %v556_v36 = vadd.f32 1e-06, %v544_v5 }
 0x27a   : > { %924 = vlog2.f32 %v557_v25 }
 0x27b   : > { %v552_v6 = vpop.xlane.xlu1 %551  ;;  %v542_v9 = vpop.xlane.xlu0 %541 }
 0x27c   : > { %v555_v27 = vadd.f32 1e-06, %v542_v9  ;;  %v560_v44 = vadd.f32 1e-06, %v552_v6 }
 0x27e   : > { %926 = vlog2.f32 %v555_v27 }
 0x27f   : > { %v389_v11 = vpop.permute.xlu1 %388  ;;  %v550_v13 = vpop.xlane.xlu0 %549  ;;  %928 = vlog2.f32 %v558_v32 }
 0x280   : > { %vm413_vm8 = vcmp.eq.s32.totalorder %v389_v11, %v1167_v10  ;;  %v559_v40 = vadd.f32 1e-06, %v550_v13  ;;  %v921_v41 = vpop.eup %920  ;;  %930 = vlog2.f32 %v556_v36 }
 0x281   : > { %v745_v12 = vsel %vm413_vm8, 1.0, %v996_v18  ;;  %v562_v47 = vmul.f32 0.6931472, %v921_v41 }
 0x282   : > { %v1172_v14 = vmul.f32 %v1117_v19, %v745_v12  ;;  %932 = vlog2.f32 %v559_v40 }
 0x283   : > { %v392_v20 = vpop.permute.xlu1 %391  ;;  %934 = vlog2.f32 %v560_v44 }
 0x284   : > { %vm414_vm9 = vcmp.eq.s32.totalorder %v392_v20, %v1167_v10  ;;  %611 = vadd.xlane.f32.xlu0 %v1172_v14 }
 0x285   : > { %v746_v21 = vsel %vm414_vm9, 1.0, %v996_v18 }
 0x286   : > { %v1177_v24 = vmul.f32 %v755_v45, %v746_v21 }
 0x287   : > { %v386_v23 = vpop.permute.xlu0 %385  ;;  %v395_v26 = vpop.permute.xlu1 %394 }
 0x288   : > { %vm412_vm10 = vcmp.eq.s32.totalorder %v386_v23, %v1167_v10  ;;  %vm415_vm11 = vcmp.eq.s32.totalorder %v395_v26, %v1167_v10  ;;  %613 = vadd.xlane.f32.xlu0 %v1177_v24 }
 0x289   : > { %v744_v19 = vsel %vm412_vm10, 1.0, %v996_v18  ;;  %v747_v31 = vsel %vm415_vm11, 1.0, %v996_v18 }
 0x28a   : > { %v481_v30 = vmul.f32 %v1126_v28, %v744_v19  ;;  %v484_v35 = vmul.f32 %v1143_v39, %v747_v31  ;;  %v923_v39 = vpop.eup %922 }
 0x28b   : > { %v398_v33 = vpop.permute.xlu1 %397  ;;  %v564_v55 = vmul.f32 0.6931472, %v923_v39 }
 0x28c   : > { %609 = vadd.xlane.f32.xlu1 %v481_v30  ;;  %vm416_vm12 = vcmp.eq.s32.totalorder %v398_v33, %v1167_v10 }
 0x28d   : > { %v748_v34 = vsel %vm416_vm12, 1.0, %v996_v18  ;;  %v578_v2 = vsub.f32 %v1087_v54, %v564_v55 }
 0x28e   : > { %v485_v38 = vmul.f32 %v1140_v37, %v748_v34  ;;  %v925_v37 = vpop.eup %924 }
 0x28f   : > { %v401_v28 = vpop.permute.xlu1 %400  ;;  %v927_v50 = vpop.eup %926  ;;  %v570_v56 = vmul.f32 0.6931472, %v925_v37  ;;  %v586_v5 = vmul.f32 %v578_v2, %v1172_v14 }
 0x290   : > { %615 = vadd.xlane.f32.xlu1 %v484_v35  ;;  %vm417_vm13 = vcmp.eq.s32.totalorder %v401_v28, %v1167_v10  ;;  %617 = vadd.xlane.f32.xlu0 %v485_v38  ;;  %v929_v57 = vpop.eup %928  ;;  %v566_v59 = vmul.f32 0.6931472, %v927_v50 }
 0x291   : > { %v749_v42 = vsel %vm417_vm13, 1.0, %v996_v18  ;;  %v931_v0 = vpop.eup %930  ;;  %v572_v1 = vmul.f32 0.6931472, %v929_v57 }
 0x292   : > { %v486_v43 = vmul.f32 %v1131_v29, %v749_v42  ;;  %v577_v29 = vsub.f32 %v1093_v62, %v562_v47  ;;  %v933_v3 = vpop.eup %932  ;;  %v579_v62 = vsub.f32 %v1105_v8, %v566_v59  ;;  %v568_v6 = vmul.f32 0.6931472, %v931_v0 }
 0x293   : > { %v404_v45 = vpop.permute.xlu1 %403  ;;  %v935_v9 = vpop.eup %934 }
 0x294   : > { %vm418_vm14 = vcmp.eq.s32.totalorder %v404_v45, %v1167_v10  ;;  %619 = vadd.xlane.f32.xlu1 %v486_v43  ;;  %v585_v60 = vmul.f32 %v577_v29, %v481_v30  ;;  %v576_v12 = vmul.f32 0.6931472, %v935_v9 }
 0x295   : > { %v750_v48 = vsel %vm418_vm14, 1.0, %v996_v18 }
 0x296   : > { %v487_v49 = vmul.f32 %v1157_v51, %v750_v48  ;;  %v581_v51 = vsub.f32 %v1103_v7, %v570_v56  ;;  %v580_v7 = vsub.f32 %v1095_v63, %v568_v6  ;;  %v584_v8 = vsub.f32 %v1114_v17, %v576_v12 }
 0x297   : > { %v407_v52 = vpop.permute.xlu1 %406 }
 0x298   : > { %vm419_vm15 = vcmp.eq.s32.totalorder %v407_v52, %v1167_v10  ;;  %621 = vadd.xlane.f32.xlu0 %v487_v49  ;;  %v589_v4 = vmul.f32 %v581_v51, %v485_v38  ;;  %v587_v10 = vmul.f32 %v579_v62, %v1177_v24  ;;  %v588_v14 = vmul.f32 %v580_v7, %v484_v35 }
 0x299   : > { %v751_v58 = vsel %vm419_vm15, 1.0, %v996_v18  ;;  %v574_v18 = vmul.f32 0.6931472, %v933_v3 }
 0x29a   : > { %v488_v61 = vmul.f32 %v1152_v46, %v751_v58  ;;  %v582_v46 = vsub.f32 %v1085_v53, %v572_v1 }
 0x29b   : > { %v583_v54 = vsub.f32 %v1112_v16, %v574_v18 }
 0x29c   : > { %593 = vadd.xlane.f32.xlu0 %v585_v60  ;;  %623 = vadd.xlane.f32.xlu1 %v488_v61  ;;  %v590_v11 = vmul.f32 %v582_v46, %v486_v43  ;;  %v592_v15 = vmul.f32 %v584_v8, %v488_v61 }
 0x29d   : > { %v591_v13 = vmul.f32 %v583_v54, %v487_v49 }
 0x2a0   : > { %601 = vadd.xlane.f32.xlu0 %v589_v4  ;;  %595 = vadd.xlane.f32.xlu1 %v586_v5 }
 0x2a4   : > { %597 = vadd.xlane.f32.xlu0 %v587_v10  ;;  %603 = vadd.xlane.f32.xlu1 %v590_v11 }
 0x2a8   : > { %605 = vadd.xlane.f32.xlu0 %v591_v13  ;;  %599 = vadd.xlane.f32.xlu1 %v588_v14 }
 0x2ac   : > { %607 = vadd.xlane.f32.xlu1 %v592_v15 }
 0x311   : > { %v612_v53 = vpop.xlane.xlu0 %611 }
 0x315   : > { %v614_v21 = vpop.xlane.xlu0 %613 }
 0x319   : > { %v610_v20 = vpop.xlane.xlu1 %609 }
 0x31a   : > { %936 = vrcp.f32 %v610_v20 }
 0x31b   : > { %938 = vrcp.f32 %v612_v53 }
 0x31d   : > { %v616_v22 = vpop.xlane.xlu1 %615  ;;  %v618_v23 = vpop.xlane.xlu0 %617 }
 0x31e   : > { %940 = vrcp.f32 %v618_v23 }
 0x31f   : > { %942 = vrcp.f32 %v614_v21 }
 0x321   : > { %v620_v16 = vpop.xlane.xlu1 %619 }
 0x322   : > { %944 = vrcp.f32 %v620_v16 }
 0x323   : > { %946 = vrcp.f32 %v616_v22 }
 0x324   : > { %v937_v63 = vpop.eup %936 }
 0x325   : > { %v622_v24 = vpop.xlane.xlu0 %621  ;;  %v939_v19 = vpop.eup %938 }
 0x326   : > { %948 = vrcp.f32 %v622_v24 }
 0x328   : > { %v941_v27 = vpop.eup %940 }
 0x329   : > { %v594_v17 = vpop.xlane.xlu0 %593  ;;  %v624_v25 = vpop.xlane.xlu1 %623 }
 0x32a   : > { %v626_v26 = vmul.f32 %v937_v63, %v594_v17  ;;  %950 = vrcp.f32 %v624_v25  ;;  %v943_v34 = vpop.eup %942 }
 0x32c   : > { %642 = vst.msk [vmem:[%s1212_s21] sm:$0xff] %vm641_vm0, %v626_v26  ;;  %v945_v35 = vpop.eup %944 }
 0x32d   : > { %v602_v30 = vpop.xlane.xlu0 %601  ;;  %v596_v31 = vpop.xlane.xlu1 %595 }
 0x32e   : > { %v634_v32 = vmul.f32 %v941_v27, %v602_v30  ;;  %v628_v33 = vmul.f32 %v939_v19, %v596_v31  ;;  %v947_v41 = vpop.eup %946 }
 0x330   : > { %646 = vst.msk [vmem:[%s1212_s21 + $0x20] sm:$0xff] %vm641_vm0, %v634_v32  ;;  %643 = vst.msk [vmem:[%s1212_s21 + $0x8] sm:$0xff] %vm641_vm0, %v628_v33  ;;  %v949_v42 = vpop.eup %948 }
 0x331   : > { %v598_v36 = vpop.xlane.xlu0 %597  ;;  %v604_v38 = vpop.xlane.xlu1 %603 }
 0x332   : > { %v630_v40 = vmul.f32 %v943_v34, %v598_v36  ;;  %v636_v28 = vmul.f32 %v945_v35, %v604_v38 }
 0x334   : > { %644 = vst.msk [vmem:[%s1212_s21 + $0x10] sm:$0xff] %vm641_vm0, %v630_v40  ;;  %647 = vst.msk [vmem:[%s1212_s21 + $0x28] sm:$0xff] %vm641_vm0, %v636_v28  ;;  %v951_v47 = vpop.eup %950 }
 0x335   : > { %v606_v43 = vpop.xlane.xlu0 %605  ;;  %v600_v44 = vpop.xlane.xlu1 %599 }
 0x336   : > { %v638_v45 = vmul.f32 %v949_v42, %v606_v43  ;;  %v632_v39 = vmul.f32 %v947_v41, %v600_v44 }
 0x338   : > { %648 = vst.msk [vmem:[%s1212_s21 + $0x30] sm:$0xff] %vm641_vm0, %v638_v45  ;;  %645 = vst.msk [vmem:[%s1212_s21 + $0x18] sm:$0xff] %vm641_vm0, %v632_v39 }
 0x339   : > { %v608_v37 = vpop.xlane.xlu1 %607 }
 0x33a   : > { %v640_v48 = vmul.f32 %v951_v47, %v608_v37 }
 0x33c   : > { %649 = vst.msk [vmem:[%s1212_s21 + $0x38] sm:$0xff] %vm641_vm0, %v640_v48 }
 0x33d PF: > { %s15_s15 = sadd.s32 1, %s990_s15  }
 0x33e   : > { %p12_p3 = scmp.ge.s32.totalorder %s15_s15, 4  }
 0x340   :  { %14 = sbr.rel (!%p12_p3) target bundleno = 1 (0x1), region = 74 }
 0x347   :  { %672 = vsyncpa [#allocation3], 1 }
 0x348   :  { %674 = vsyncpa [#allocation3 + $0x1], 1 }

</bundles_post_ra>
